<compile_context>
chip_gen: v6e
topology: v6e:2x2x1
jax: 0.10.0
libtpu: 0.0.40
codegen_flags: <defaults>
</compile_context>

<pallas_src>
import jax
import jax.numpy as jnp
from jax import lax
from jax.experimental import pallas as pl
from jax.experimental.pallas import tpu as pltpu


# Contract last dim of both operands: (tm, tk) x (tn, tk) -> (tm, tn).
# This is the standard A @ B.T (QK^T) contraction and lowers MXU-native,
# transpose-free on Mosaic.
_NT_DIMS = (((1,), (1,)), ((), ()))

# Explicit scoped-VMEM limit: big enough for 512x1024 output tiles with
# D<=4096 bf16 inputs (~28 MiB double-buffered), small enough to leave
# headroom on v7x (64 MiB physical VMEM).
_VMEM_LIMIT_BYTES = 48 * 1024 * 1024


def _sigmoid(x):
    """sigmoid(x) = 0.5 * (tanh(x/2) + 1): one EUP transcendental, not two."""
    return 0.5 * (jnp.tanh(0.5 * x) + 1.0)


def _ipd_kernel_single_k(zrow_ref, zcol_ref, adj_ref):
    """Whole reduction dim in one block: one NT matmul + sigmoid + store."""
    s = lax.dot_general(
        zrow_ref[...], zcol_ref[...], _NT_DIMS, preferred_element_type=jnp.float32
    )
    adj_ref[...] = _sigmoid(s).astype(adj_ref.dtype)


def _ipd_kernel_multi_k_inplace(zrow_ref, zcol_ref, adj_ref):
    """k-loop variant, f32 output: accumulate directly into the resident output
    block.  Correct only because the output BlockSpec returns the same (i, j)
    block across k and k is the innermost 'arbitrary' grid axis."""
    k = pl.program_id(2)

    @pl.when(k == 0)
    def _():
        adj_ref[...] = jnp.zeros_like(adj_ref)

    adj_ref[...] += lax.dot_general(
        zrow_ref[...], zcol_ref[...], _NT_DIMS, preferred_element_type=jnp.float32
    )

    @pl.when(k == pl.num_programs(2) - 1)
    def _():
        adj_ref[...] = _sigmoid(adj_ref[...])


def _ipd_kernel_multi_k_scratch(zrow_ref, zcol_ref, adj_ref, acc_ref):
    """k-loop variant, non-f32 output: f32 scratch accumulator, cast at last k."""
    k = pl.program_id(2)

    @pl.when(k == 0)
    def _():
        acc_ref[...] = jnp.zeros_like(acc_ref)

    acc_ref[...] += lax.dot_general(
        zrow_ref[...], zcol_ref[...], _NT_DIMS, preferred_element_type=jnp.float32
    )

    @pl.when(k == pl.num_programs(2) - 1)
    def _():
        adj_ref[...] = _sigmoid(acc_ref[...]).astype(adj_ref.dtype)


def _pick_tile(dim, unit, preferred):
    """Largest divisor of `dim` that is a multiple of `unit` and <= `preferred`.

    Falls back to the full extent (a full-dim block is always a legal block shape).
    """
    best = None
    d = unit
    cap = min(dim, preferred)
    while d <= cap:
        if dim % d == 0:
            best = d
        d += unit
    return best if best is not None else dim


def _pick_row_tile(n):
    """Row-axis (i) output tile: <=512 and >=2 blocks when possible, so the
    megacore split along the first 'parallel' axis always has work for both
    TensorCores."""
    preferred = 512
    if n >= 256:
        preferred = min(preferred, n // 2)
    return _pick_tile(n, 128, preferred)


def _pick_col_tile(n):
    """Column-axis (j) output tile: as big (lane-dense) as possible, up to 1024."""
    return _pick_tile(n, 128, 1024)


def inner_product_decoder(
    z,
    *,
    dropout=0.0,
    training=False,
    compute_dtype=jnp.bfloat16,
    out_dtype=None,
    tm=None,
    tn=None,
    tk=None,
):
    """Pallas implementation of InnerProductDecoder.forward: sigmoid(z @ z.T).

    Dropout is identity in eval mode (training=False), matching
    F.dropout(..., training=False).  Inputs are cast to `compute_dtype`
    (bfloat16 by default, MXU-native; pass float32 for an exact-parity mode);
    accumulation is always float32.  The output dtype defaults to z.dtype;
    pass out_dtype=jnp.bfloat16 to halve the N^2 HBM write (the dominant cost
    for typical decoder D) -- sigmoid outputs live in [0, 1] so bf16 is plenty.
    """
    del dropout, training  # TODO(synk): training-mode dropout not implemented.

    N, D = z.shape
    out_dtype = jnp.dtype(z.dtype if out_dtype is None else out_dtype)

    # --- tile selection -----------------------------------------------------
    if tm is None:
        tm = _pick_row_tile(N)
    if tn is None:
        tn = _pick_col_tile(N)
    if tk is None:
        # Collapse the reduction axis entirely when D is moderate: 2-D grid,
        # no accumulator machinery, z row tile stays resident across j.
        tk = D if D <= 4096 else _pick_tile(D, 128, 512)
    assert N % tm == 0 and N % tn == 0 and D % tk == 0, "shapes must tile evenly"

    zc = z.astype(compute_dtype)

    in_bytes = jnp.dtype(compute_dtype).itemsize
    cost = pl.CostEstimate(
        flops=2 * N * N * D,
        transcendentals=N * N,
        bytes_accessed=2 * N * D * in_bytes + N * N * out_dtype.itemsize,
    )

    if tk == D:
        # ---- 2-D grid, single reduction block ------------------------------
        grid = (N // tm, N // tn)
        grid_spec = pltpu.PrefetchScalarGridSpec(
            num_scalar_prefetch=0,
            grid=grid,
            in_specs=[
                pl.BlockSpec((tm, D), lambda i, j: (i, 0)),
                pl.BlockSpec((tn, D), lambda i, j: (j, 0)),
            ],
            out_specs=pl.BlockSpec((tm, tn), lambda i, j: (i, j)),
        )
        kernel = _ipd_kernel_single_k
        dim_sem = ("parallel", "parallel")
    else:
        # ---- 3-D grid with k reduction --------------------------------------
        grid = (N // tm, N // tn, D // tk)
        in_specs = [
            pl.BlockSpec((tm, tk), lambda i, j, k: (i, k)),
            pl.BlockSpec((tn, tk), lambda i, j, k: (j, k)),
        ]
        out_specs = pl.BlockSpec((tm, tn), lambda i, j, k: (i, j))
        if out_dtype == jnp.float32:
            kernel = _ipd_kernel_multi_k_inplace
            scratch_shapes = []
        else:
            kernel = _ipd_kernel_multi_k_scratch
            scratch_shapes = [pltpu.VMEM((tm, tn), jnp.float32)]
        grid_spec = pltpu.PrefetchScalarGridSpec(
            num_scalar_prefetch=0,
            grid=grid,
            in_specs=in_specs,
            out_specs=out_specs,
            scratch_shapes=scratch_shapes,
        )
        kernel = kernel
        dim_sem = ("parallel", "parallel", "arbitrary")

    return pl.pallas_call(
        kernel,
        out_shape=jax.ShapeDtypeStruct((N, N), out_dtype),
        grid_spec=grid_spec,
        compiler_params=pltpu.CompilerParams(
            dimension_semantics=dim_sem,
            vmem_limit_bytes=_VMEM_LIMIT_BYTES,
        ),
        cost_estimate=cost,
    )(zc, zc)


if __name__ == "__main__":
    # Small, deterministic example: 256 nodes, 128-dim latent embeddings.
    key = jax.random.PRNGKey(0)
    N, D = 256, 128
    z = jax.random.normal(key, (N, D), dtype=jnp.float32)

    adj = inner_product_decoder(z, dropout=0.0, training=False)
    jax.block_until_ready(adj)
    assert adj.shape == (N, N)
    assert adj.dtype == z.dtype

    # Strict check vs. a reference that uses the same bf16-input / f32-accum path.
    z_bf = z.astype(jnp.bfloat16)
    ref_bf16 = jax.nn.sigmoid(
        jnp.dot(z_bf, z_bf.T, preferred_element_type=jnp.float32)
    ).astype(jnp.float32)
    assert jnp.allclose(adj, ref_bf16, atol=2e-3, rtol=2e-3)

    # Loose sanity check vs. the full-f32 PyTorch-semantics reference
    # (difference comes only from the bf16 input cast; outputs live in [0, 1]).
    ref_f32 = jax.nn.sigmoid(z @ z.T)
    assert jnp.allclose(adj, ref_f32, atol=5e-2)

    # The decoder output must be (numerically) symmetric.
    assert jnp.allclose(adj, adj.T, atol=2e-3)

    # bf16-output mode (halves the N^2 HBM write; values are in [0, 1]).
    adj_bf16 = inner_product_decoder(z, out_dtype=jnp.bfloat16)
    jax.block_until_ready(adj_bf16)
    assert adj_bf16.dtype == jnp.bfloat16
    assert jnp.allclose(adj_bf16.astype(jnp.float32), ref_bf16, atol=1e-2)

    # Also exercise the multi-k (large-D) paths once, on a small forced tiling.
    adj_mk = inner_product_decoder(z, tm=128, tn=128, tk=64)
    jax.block_until_ready(adj_mk)
    assert jnp.allclose(adj_mk, ref_bf16, atol=2e-3, rtol=2e-3)

    adj_mk_bf16 = inner_product_decoder(
        z, tm=128, tn=128, tk=64, out_dtype=jnp.bfloat16
    )
    jax.block_until_ready(adj_mk_bf16)
    assert jnp.allclose(adj_mk_bf16.astype(jnp.float32), ref_bf16, atol=1e-2)

    print("KERNEL_OK")
</pallas_src>

<mosaic_0001>
module attributes {stable_mosaic.version = 11 : i64} {
  func.func @_ipd_kernel_single_k(%arg0: i32, %arg1: i32, %arg2: memref<128x128xbf16, #tpu.memory_space<vmem>>, %arg3: memref<256x128xbf16, #tpu.memory_space<vmem>>, %arg4: memref<128x256xf32, #tpu.memory_space<vmem>>) attributes {dimension_semantics = [#tpu.dimension_semantics<parallel>, #tpu.dimension_semantics<parallel>], iteration_bounds = array<i64: 2, 1>, scalar_prefetch = 0 : i64, scratch_operands = 0 : i64, tpu.core_type = #tpu.core_type<tc>, window_params = [{transform_indices = @transform_0, window_bounds = array<i64: 128, 128>}, {transform_indices = @transform_1, window_bounds = array<i64: 256, 128>}, {transform_indices = @transform_2, window_bounds = array<i64: 128, 256>}]} {
    %c0 = arith.constant 0 : index
    %c0_0 = arith.constant 0 : index
    %0 = vector.load %arg2[%c0, %c0_0] : memref<128x128xbf16, #tpu.memory_space<vmem>>, vector<128x128xbf16>
    %c0_1 = arith.constant 0 : index
    %c0_2 = arith.constant 0 : index
    %1 = vector.load %arg3[%c0_1, %c0_2] : memref<256x128xbf16, #tpu.memory_space<vmem>>, vector<256x128xbf16>
    %cst = arith.constant dense<0.000000e+00> : vector<128x256xf32>
    %2 = tpu.matmul %0, %1, %cst {dimension_numbers = #tpu.dot_dimension_numbers<[1], [1], [0], [0], [0, 0, 1, 0], [], []>} : vector<128x128xbf16>, vector<256x128xbf16>, vector<128x256xf32> -> vector<128x256xf32>
    %cst_3 = arith.constant 5.000000e-01 : f32
    %3 = vector.broadcast %cst_3 : f32 to vector<128x256xf32>
    %4 = arith.mulf %3, %2 : vector<128x256xf32>
    %5 = math.tanh %4 : vector<128x256xf32>
    %cst_4 = arith.constant 1.000000e+00 : f32
    %6 = vector.broadcast %cst_4 : f32 to vector<128x256xf32>
    %7 = arith.addf %5, %6 : vector<128x256xf32>
    %cst_5 = arith.constant 5.000000e-01 : f32
    %8 = vector.broadcast %cst_5 : f32 to vector<128x256xf32>
    %9 = arith.mulf %8, %7 : vector<128x256xf32>
    %c0_6 = arith.constant 0 : index
    %c0_7 = arith.constant 0 : index
    %10 = vector.load %arg4[%c0_6, %c0_7] : memref<128x256xf32, #tpu.memory_space<vmem>>, vector<128x256xf32>
    tpu.vector_store %arg4[%c0_6, %c0_7], %9 {strides = array<i32>} : memref<128x256xf32, #tpu.memory_space<vmem>>, vector<128x256xf32>,
    return
  }
  func.func @transform_0(%arg0: i32, %arg1: i32) -> (i32, i32) {
    %c0_i32 = arith.constant 0 : i32
    %c0_i32_0 = arith.constant 0 : i32
    return %arg0, %c0_i32 : i32, i32
  }
  func.func @transform_1(%arg0: i32, %arg1: i32) -> (i32, i32) {
    %c0_i32 = arith.constant 0 : i32
    %c0_i32_0 = arith.constant 0 : i32
    return %arg1, %c0_i32 : i32, i32
  }
  func.func @transform_2(%arg0: i32, %arg1: i32) -> (i32, i32) {
    %c0_i32 = arith.constant 0 : i32
    return %arg0, %arg1 : i32, i32
  }
}

</mosaic_0001>

<bundles_post_ra>
// kernel: tpu_custom_call.1
= control target key start
LH: loop header
LB: loop body
LE: loop exit
PB: predicated region body
PF: predicated region fallthrough
CT: control target
= control target key end

     0   :  { %7 = vsyncpa [#allocation3], 0  ;;  %s1437_s0 = inlined_call_operand.hbm [shape: bf16[256,128], index: 0, kind: input, shape index: {}]   ;;  %s1438_s1 = inlined_call_operand.hbm [shape: bf16[256,128], index: 1, kind: input, shape index: {}]   ;;  %s1439_s2 = inlined_call_operand.hbm [shape: f32[256,256], index: 2, kind: output, shape index: {}]  }
   0x1   :  { %9 = vsyncpa [#allocation3 + $0x1], 0 }
   0x2   :  { %10 = vsyncpa [#allocation6], 0 }
   0x3   :  { %11 = vsyncpa [#allocation4], 0 }
   0x4   :  { %13 = vsyncpa [#allocation4 + $0x1], 0  ;;  %s1202_s9 = smov 0   ;;  %s1204_s10 = smov 0  }
   0x5   :  { %s1206_s11 = smov 0   ;;  %s1208_s12 = smov 0  }
   0x6   :  { %s1210_s13 = smov 0   ;;  %s1212_s14 = smov 0  }
   0x7 LB: > { %s782_s15 = sadd.s32 4294967295, %s1178_s14   ;;  %s783_s16 = sadd.s32 4294967294, %s1178_s14   ;;  %s1178_s14 = sphi %s1212_s14, %s19_s14   ;;  %s1174_s13 = sphi %s1210_s13, %s1459_s13   ;;  %s1170_s12 = sphi %s1208_s12, %s1458_s12   ;;  %s1166_s11 = sphi %s1206_s11, %s1457_s11   ;;  %s1162_s10 = sphi %s1204_s10, %s1456_s10   ;;  %s1158_s9 = sphi %s1202_s9, %s1455_s9  }
   0x8   : > { %p51_p0 = scmp.ne.s32.totalorder %s1162_s10, %s1158_s9  ;;  %p1236_p1 = scmp.eq.s32.totalorder %s782_s15, 0 }
   0x9   : > { %p1240_p2 = scmp.eq.s32.totalorder %s782_s15, 1  ;;  %p109_p3 = scmp.eq.s32.totalorder %s783_s16, 1 }
   0xa   : > { %p1246_p4 = por %p1236_p1, %p51_p0  ;;  %p784_p5 = scmp.ge.s32.totalorder %s1178_s14, 1 }
   0xb   : > { %p1251_p6 = por %p109_p3, %p51_p0  ;;  %p116_p7 = scmp.lt.s32.totalorder %s1178_s14, 3 }
   0xc   : > { %s1444_s19 = scalar_select %p1246_p4, 1, 0 }
   0xd   : > { %s1445_s20 = scalar_select %p1251_p6, 1, 0 }
   0xe   : > { %p1256_p8 = pnand %p784_p5, %p116_p7  ;;  %s1180_s22 = smov [#allocation5]  }
   0xf   : > { %s131_s23 = sshll.u32 %s1180_s22, 4  ;;  %s31_s25 = sadd.s32 1, %s1174_s13  ;;  %s132_s23 = int_to_ptr.vmem [resolvable:$true] %s131_s23 }
  0x10   : > { %p883_p9 = pneg %p1256_p8  ;;  %s1051_s26 = scalar_lea.vmem %s132_s23, 2048 }
  0x11   : > { %p1052_p13 = scmp.ne.s32.totalorder %s132_s23, %s1051_s26  ;;  %p1059_p5 = scmp.lt.s32.totalorder %s132_s23, %s132_s23 }
  0x12   : > { %p1265_p11 = pnand %p883_p9, %p1236_p1  ;;  %p1060_p7 = scmp.lt.s32.totalorder %s1051_s26, %s1051_s26 }
  0x14   : > { %p1042_p12 = pneg %p1265_p11  ;;  %p1061_p6 = por %p1060_p7, %p1059_p5 }
  0x16   : > { %p1054_p0 = pnand %p1052_p13, %p1042_p12 }
  0x18   : > { %p1055_p3 = pneg %p1054_p0 }
  0x1a   : > { %p1062_p4 = pnand %p1061_p6, %p1055_p3 }
  0x1c   : > { %1065 = shalt.err (!%p1062_p4)
}
  0x1d   : > { %s1441_s27 = smov 64   ;;  %s1182_s28 = smov 4  }
  0x1e   : > { %886 = dma.hbm_to_vmem [thread:$0]  (!%p1265_p11), %s1438_s1, 2048, %s132_s23, [#allocation6], %s1441_s27, %s1441_s27, %s1182_s28  }
  0x1f   : > { %p33_p4 = scmp.ge.s32.totalorder %s31_s25, 2  ;;  %s38_s3 = sadd.s32 1, %s1166_s11 }
  0x20   : > { %p45_p6 = scmp.ne.s32.totalorder %s1166_s11, %s1162_s10  ;;  %p46_p9 = scmp.eq.s32.totalorder %s1178_s14, 0 }
  0x21   : > { %s1461_s25 = smov (%p33_p4, %s31_s25), 0  ;;  %p896_p0 = scmp.lt.s32.totalorder %s1178_s14, 2 }
  0x22   : > { %p1286_p12 = por %p46_p9, %p45_p6  ;;  %p1292_p13 = por %p1240_p2, %p45_p6 }
  0x23   : > { %s35_s6 = ssub.s32 %s1174_s13, %s1461_s25  ;;  %s145_s7 = sand.u32 1, %s1166_s11  }
  0x24   : > { %p36_p11 = scmp.eq.s32.totalorder %s35_s6, 0  ;;  %s787_s8 = sshll.u32 %s145_s7, 6 }
  0x25   : > { %s824_s16 = sshll.u32 %s1174_s13, 10  ;;  %s149_s26 = scalar_lea.vmem [#allocation2], %s787_s8 }
  0x26   : > { %s1301_s15 = scalar_select %p36_p11, %s1166_s11, %s38_s3  }
  0x27   : > { %s155_s24 = scalar_lea.hbm %s1437_s0, %s824_s16  ;;  %s156_s29 = sshll.u32 %s149_s26, 4  ;;  %s157_s29 = int_to_ptr.vmem [resolvable:$true] %s156_s29 }
  0x28   : > { %p1309_p2 = pnand %p896_p0, %p1286_p12  ;;  %s146_s30 = scalar_lea.sflag [#allocation3], %s145_s7 }
  0x29   : > { %s1079_s6 = scalar_lea.vmem %s157_s29, 1024  ;;  %s1183_s3 = smov [#allocation2]  }
  0x2a   : > { %p1068_p3 = pneg %p1309_p2  ;;  %p1080_p5 = scmp.ne.s32.totalorder %s157_s29, %s1079_s6 }
  0x2b   : > { %s1084_s27 = sshll.u32 %s1183_s3, 4  ;;  %s1085_s27 = int_to_ptr.vmem [resolvable:$false] %s1084_s27 }
  0x2c   : > { %p1082_p7 = pnand %p1080_p5, %p1068_p3  ;;  %s1086_s16 = scalar_lea.vmem %s1085_s27, 2048 }
  0x2d   : > { %p1087_p6 = scmp.lt.s32.totalorder %s157_s29, %s1085_s27  ;;  %p1088_p9 = scmp.lt.s32.totalorder %s1086_s16, %s1079_s6 }
  0x2e   : > { %p1083_p4 = pneg %p1082_p7 }
  0x2f   : > { %p1089_p11 = por %p1088_p9, %p1087_p6 }
  0x31   : > { %p1090_p10 = pnand %p1089_p11, %p1083_p4 }
  0x33   : > { %1093 = shalt.err (!%p1090_p10)
}
  0x34   : > { %s1451_s4 = smov 64   ;;  %168 = sbr.rel (%p1256_p8) target bundleno = 383 (0x17f), region = 28 }
  0x35   : > { %890 = dma.hbm_to_vmem [thread:$0]  (!%p1309_p2), %s155_s24, 1024, %s157_s29, %s146_s30, %s1451_s4, %s1451_s4, %s1182_s28  }
  0x36   : > { %s1323_s7 = sand.u32 (!%p1256_p8), 1, %s1162_s10   ;;  %p1452_p10 = scmp.ne.s32.totalorder (!%p1256_p8), %s1444_s19, 0 }
  0x37   : > { %s791_s27 = sshll.u32 (!%p1256_p8), %s1323_s7, 6  ;;  %s171_s8 = scalar_lea.sflag (!%p1256_p8), [#allocation3], %s1323_s7 }
  0x38   : > { %s1327_s22 = scalar_lea.vmem (!%p1256_p8), [#allocation2], %s791_s27 }
  0x39   : > { %1145 = dma.done.wait (%p1452_p10), %s171_s8, 1024  }
  0x3a   : > { %1147 = vsyncadd (%p1452_p10), %s171_s8, 4294966272 }
  0x3b   : > { %1149 = dma.done.wait (%p1236_p1), [#allocation6], 2048  }
  0x3c   : > { %1151 = vsyncadd (%p1236_p1), [#allocation6], 4294965248  ;;  %v952_v0 = vld [vmem:[#allocation5 + $0x78] sm:$0xff]   ;;  %v954_v2 = vld [vmem:[#allocation5 + $0x70] sm:$0xff]   ;;  %s793_s17 = sshll.u32 %s1323_s7, 8  ;;  %s826_s21 = sshll.u32 %s1170_s12, 12 }
  0x3d   : > { %v953_v1 = vld [vmem:[#allocation5 + $0x38] sm:$0xff]   ;;  %827 = vmatprep.subr.bf16.mxu0 %v952_v0  ;;  %859 = vmatprep.subr.bf16.mxu1 %v952_v0  ;;  %v955_v3 = vld [vmem:[#allocation5 + $0x30] sm:$0xff]   ;;  %v956_v4 = vld [vmem:[#allocation5 + $0x68] sm:$0xff]   ;;  %s1348_s19 = scalar_lea.vmem [#allocation7], %s793_s17  ;;  %s1384_s26 = scalar_lea.hbm %s1439_s2, %s826_s21 }
  0x3e   : > { %828 = vmatpush3.bf16.xpose.msra.mxu0 %v953_v1  ;;  %867 = vmatpush3.bf16.xpose.msra.mxu1 %v953_v1  ;;  %v957_v5 = vld [vmem:[#allocation5 + $0x28] sm:$0xff]   ;;  %v958_v6 = vld [vmem:[#allocation5 + $0x60] sm:$0xff]   ;;  %v960_v10 = vld [vmem:[#allocation5 + $0x58] sm:$0xff]   ;;  %s686_s28 = sshll.u32 %s1348_s19, 4  ;;  %s670_s12 = scalar_lea.sflag [#allocation4], %s1323_s7  ;;  %s1386_s28 = int_to_ptr.vmem [resolvable:$true] %s686_s28 }
  0x3f   : > { %829 = vmatprep.subr.bf16.mxu0 %v954_v2  ;;  %860 = vmatprep.subr.bf16.mxu1 %v954_v2  ;;  %v968_v7 = vld [vmem:[%s1327_s22] sm:$0xff]   ;;  %v961_v11 = vld [vmem:[#allocation5 + $0x18] sm:$0xff]   ;;  %v962_v12 = vld [vmem:[#allocation5 + $0x50] sm:$0xff]   ;;  %s1094_s29 = scalar_lea.vmem %s1386_s28, 4096  ;;  %s1184_s18 = smov [#allocation7]  }
  0x40   : > { %v969_v8 = vld [vmem:[%s1327_s22 + $0x20] sm:$0xff]   ;;  %843 = vmatprep.mubr.bf16.mxu0 %v968_v7  ;;  %v963_v13 = vld [vmem:[#allocation5 + $0x10] sm:$0xff]   ;;  %v964_v14 = vld [vmem:[#allocation5 + $0x48] sm:$0xff]   ;;  %p1095_p1 = scmp.ne.s32.totalorder %s1386_s28, %s1094_s29  ;;  %s1098_s30 = sshll.u32 %s1184_s18, 4  ;;  %s1099_s30 = int_to_ptr.vmem [resolvable:$false] %s1098_s30 }
  0x41   : > { %851 = vmatprep.mubr.bf16.mxu1 %v969_v8  ;;  %v959_v9 = vld [vmem:[#allocation5 + $0x20] sm:$0xff]   ;;  %v965_v15 = vld [vmem:[#allocation5 + $0x8] sm:$0xff]   ;;  %v972_v20 = vld [vmem:[%s1327_s22 + $0x10] sm:$0xff]   ;;  %s1100_s6 = scalar_lea.vmem %s1099_s30, 8192  ;;  %p1101_p0 = scmp.lt.s32.totalorder %s1386_s28, %s1099_s30 }
  0x42   : > { %v966_v16 = vld [vmem:[#allocation5 + $0x40] sm:$0xff]   ;;  %v970_v18 = vld [vmem:[%s1327_s22 + $0x8] sm:$0xff]   ;;  %v973_v21 = vld [vmem:[%s1327_s22 + $0x30] sm:$0xff]   ;;  %p1096_p8 = pnand %p1095_p1, %p1292_p13  ;;  %p1102_p2 = scmp.lt.s32.totalorder %s1100_s6, %s1094_s29 }
  0x43   : > { %v967_v17 = vld [vmem:[#allocation5] sm:$0xff]   ;;  %v971_v19 = vld [vmem:[%s1327_s22 + $0x28] sm:$0xff]   ;;  %v974_v22 = vld [vmem:[%s1327_s22 + $0x18] sm:$0xff]  }
  0x44   : > { %v975_v23 = vld [vmem:[%s1327_s22 + $0x38] sm:$0xff]   ;;  %p1097_p12 = pneg %p1096_p8  ;;  %p1103_p3 = por %p1102_p2, %p1101_p0 }
  0x46   : > { %830 = vmatpush3.bf16.xpose.msra.mxu0 %v955_v3  ;;  %868 = vmatpush3.bf16.xpose.msra.mxu1 %v955_v3  ;;  %p1104_p5 = pnand %p1103_p3, %p1097_p12 }
  0x47   : > { %831 = vmatprep.subr.bf16.mxu0 %v956_v4  ;;  %861 = vmatprep.subr.bf16.mxu1 %v956_v4 }
  0x4e   : > { %832 = vmatpush3.bf16.xpose.msra.mxu0 %v957_v5  ;;  %869 = vmatpush3.bf16.xpose.msra.mxu1 %v957_v5 }
  0x4f   : > { %833 = vmatprep.subr.bf16.mxu0 %v958_v6  ;;  %862 = vmatprep.subr.bf16.mxu1 %v958_v6 }
  0x56   : > { %834 = vmatpush3.bf16.xpose.msra.mxu0 %v959_v9  ;;  %870 = vmatpush3.bf16.xpose.msra.mxu1 %v959_v9 }
  0x57   : > { %835 = vmatprep.subr.bf16.mxu0 %v960_v10  ;;  %863 = vmatprep.subr.bf16.mxu1 %v960_v10 }
  0x5e   : > { %836 = vmatpush3.bf16.xpose.msra.mxu0 %v961_v11  ;;  %871 = vmatpush3.bf16.xpose.msra.mxu1 %v961_v11 }
  0x5f   : > { %837 = vmatprep.subr.bf16.mxu0 %v962_v12  ;;  %864 = vmatprep.subr.bf16.mxu1 %v962_v12 }
  0x66   : > { %838 = vmatpush3.bf16.xpose.msra.mxu0 %v963_v13  ;;  %872 = vmatpush3.bf16.xpose.msra.mxu1 %v963_v13 }
  0x67   : > { %839 = vmatprep.subr.bf16.mxu0 %v964_v14  ;;  %865 = vmatprep.subr.bf16.mxu1 %v964_v14 }
  0x6e   : > { %840 = vmatpush3.bf16.xpose.msra.mxu0 %v965_v15  ;;  %873 = vmatpush3.bf16.xpose.msra.mxu1 %v965_v15 }
  0x6f   : > { %841 = vmatprep.subr.bf16.mxu0 %v966_v16  ;;  %866 = vmatprep.subr.bf16.mxu1 %v966_v16 }
  0x76   : > { %842 = vmatpush3.bf16.xpose.msra.mxu0 %v967_v17  ;;  %874 = vmatpush3.bf16.xpose.msra.mxu1 %v967_v17 }
  0x7d   : > { %844 = vmatmul.mubr.bf16.vlgmr.msra.gmra.mxu0 %v968_v7  ;;  %852 = vmatmul.mubr.bf16.vlgmr.msra.gmra.mxu1 %v969_v8 }
  0x7e   : > { %845 = vmatprep.mubr.bf16.mxu0 %v970_v18  ;;  %853 = vmatprep.mubr.bf16.mxu1 %v971_v19 }
  0x85   : > { %846 = vmatmul.mubr.bf16.gmra.mxu0 %v970_v18  ;;  %854 = vmatmul.mubr.bf16.gmra.mxu1 %v971_v19 }
  0x86   : > { %847 = vmatprep.mubr.bf16.mxu0 %v972_v20  ;;  %855 = vmatprep.mubr.bf16.mxu1 %v973_v21 }
  0x8d   : > { %848 = vmatmul.mubr.bf16.gmra.mxu0 %v972_v20  ;;  %856 = vmatmul.mubr.bf16.gmra.mxu1 %v973_v21 }
  0x8e   : > { %849 = vmatprep.mubr.bf16.mxu0 %v974_v22  ;;  %857 = vmatprep.mubr.bf16.mxu1 %v975_v23 }
  0x95   : > { %850 = vmatmul.mubr.bf16.gmra.mxu0 %v974_v22  ;;  %858 = vmatmul.mubr.bf16.gmra.mxu1 %v975_v23 }
 0x13d   : > { %v430_v24 = vpop.f32.mrf.mxu0  ;;  %v470_v25 = vpop.f32.mrf.mxu1 }
 0x13e   : > { %v509_v26 = vmul.f32 0.5, %v430_v24  ;;  %v525_v27 = vmul.f32 0.5, %v470_v25 }
 0x13f   : > { %v432_v28 = vpop.f32.mrf.mxu0  ;;  %v472_v29 = vpop.f32.mrf.mxu1 }
 0x140   : > { %976 = vtanh.f32 %v509_v26  ;;  %v510_v30 = vmul.f32 0.5, %v432_v28  ;;  %v526_v31 = vmul.f32 0.5, %v472_v29 }
 0x141   : > { %978 = vtanh.f32 %v525_v27  ;;  %v434_v32 = vpop.f32.mrf.mxu0  ;;  %v474_v33 = vpop.f32.mrf.mxu1 }
 0x142   : > { %980 = vtanh.f32 %v510_v30  ;;  %v511_v34 = vmul.f32 0.5, %v434_v32  ;;  %v527_v35 = vmul.f32 0.5, %v474_v33 }
 0x143   : > { %982 = vtanh.f32 %v526_v31  ;;  %v436_v36 = vpop.f32.mrf.mxu0  ;;  %v476_v37 = vpop.f32.mrf.mxu1 }
 0x144   : > { %984 = vtanh.f32 %v511_v34  ;;  %v512_v38 = vmul.f32 0.5, %v436_v36  ;;  %v528_v39 = vmul.f32 0.5, %v476_v37 }
 0x145   : > { %986 = vtanh.f32 %v527_v35  ;;  %v440_v40 = vpop.f32.mrf.mxu0  ;;  %v480_v41 = vpop.f32.mrf.mxu1 }
 0x146   : > { %988 = vtanh.f32 %v512_v38  ;;  %v513_v42 = vmul.f32 0.5, %v440_v40  ;;  %v529_v43 = vmul.f32 0.5, %v480_v41 }
 0x147   : > { %990 = vtanh.f32 %v528_v39  ;;  %v442_v44 = vpop.f32.mrf.mxu0  ;;  %v482_v45 = vpop.f32.mrf.mxu1 }
 0x148   : > { %992 = vtanh.f32 %v513_v42  ;;  %v514_v46 = vmul.f32 0.5, %v442_v44  ;;  %v530_v47 = vmul.f32 0.5, %v482_v45 }
 0x149   : > { %994 = vtanh.f32 %v529_v43  ;;  %v444_v48 = vpop.f32.mrf.mxu0  ;;  %v484_v49 = vpop.f32.mrf.mxu1 }
 0x14a   : > { %996 = vtanh.f32 %v514_v46  ;;  %v515_v50 = vmul.f32 0.5, %v444_v48  ;;  %v531_v51 = vmul.f32 0.5, %v484_v49 }
 0x14b   : > { %998 = vtanh.f32 %v530_v47  ;;  %v446_v52 = vpop.f32.mrf.mxu0  ;;  %v486_v53 = vpop.f32.mrf.mxu1 }
 0x14c   : > { %1000 = vtanh.f32 %v515_v50  ;;  %v516_v54 = vmul.f32 0.5, %v446_v52  ;;  %v532_v55 = vmul.f32 0.5, %v486_v53 }
 0x14d   : > { %v977_v56 = vpop.eup %976  ;;  %1002 = vtanh.f32 %v531_v51  ;;  %v450_v57 = vpop.f32.mrf.mxu0 }
 0x14e   : > { %v490_v58 = vpop.f32.mrf.mxu1  ;;  %v979_v59 = vpop.eup %978  ;;  %v573_v60 = vadd.f32 1.0, %v977_v56  ;;  %1004 = vtanh.f32 %v516_v54  ;;  %v517_v61 = vmul.f32 0.5, %v450_v57 }
 0x14f   : > { %v533_v62 = vmul.f32 0.5, %v490_v58  ;;  %v981_v63 = vpop.eup %980  ;;  %v589_v0 = vadd.f32 1.0, %v979_v59  ;;  %1006 = vtanh.f32 %v532_v55  ;;  %v452_v1 = vpop.f32.mrf.mxu0 }
 0x150   : > { %v492_v2 = vpop.f32.mrf.mxu1  ;;  %v983_v3 = vpop.eup %982  ;;  %v605_v4 = vmul.f32 0.5, %v573_v60  ;;  %v574_v5 = vadd.f32 1.0, %v981_v63  ;;  %1008 = vtanh.f32 %v517_v61  ;;  %v518_v6 = vmul.f32 0.5, %v452_v1 }
 0x151   : > { %v985_v7 = vpop.eup %984  ;;  %v621_v8 = vmul.f32 0.5, %v589_v0  ;;  %v590_v9 = vadd.f32 1.0, %v983_v3  ;;  %1010 = vtanh.f32 %v533_v62  ;;  %v534_v10 = vmul.f32 0.5, %v492_v2  ;;  %v454_v11 = vpop.f32.mrf.mxu0 }
 0x152   : > { %v494_v12 = vpop.f32.mrf.mxu1  ;;  %v987_v13 = vpop.eup %986  ;;  %637 = vst [vmem:[%s1348_s19] sm:$0xff] %v605_v4  ;;  %v606_v14 = vmul.f32 0.5, %v574_v5  ;;  %v575_v15 = vadd.f32 1.0, %v985_v7  ;;  %1012 = vtanh.f32 %v518_v6  ;;  %v519_v16 = vmul.f32 0.5, %v454_v11 }
 0x153   : > { %v989_v17 = vpop.eup %988  ;;  %653 = vst [vmem:[%s1348_s19 + $0x80] sm:$0xff] %v621_v8  ;;  %v622_v18 = vmul.f32 0.5, %v590_v9  ;;  %v591_v19 = vadd.f32 1.0, %v987_v13  ;;  %1014 = vtanh.f32 %v534_v10  ;;  %v535_v20 = vmul.f32 0.5, %v494_v12  ;;  %v456_v21 = vpop.f32.mrf.mxu0 }
 0x154   : > { %v496_v22 = vpop.f32.mrf.mxu1  ;;  %v991_v23 = vpop.eup %990  ;;  %638 = vst [vmem:[%s1348_s19 + $0x8] sm:$0xff] %v606_v14  ;;  %v607_v24 = vmul.f32 0.5, %v575_v15  ;;  %v576_v25 = vadd.f32 1.0, %v989_v17  ;;  %1016 = vtanh.f32 %v519_v16  ;;  %v520_v26 = vmul.f32 0.5, %v456_v21 }
 0x155   : > { %v993_v27 = vpop.eup %992  ;;  %654 = vst [vmem:[%s1348_s19 + $0x88] sm:$0xff] %v622_v18  ;;  %v623_v28 = vmul.f32 0.5, %v591_v19  ;;  %v592_v29 = vadd.f32 1.0, %v991_v23  ;;  %1018 = vtanh.f32 %v535_v20  ;;  %v536_v30 = vmul.f32 0.5, %v496_v22  ;;  %v460_v31 = vpop.f32.mrf.mxu0 }
 0x156   : > { %v500_v32 = vpop.f32.mrf.mxu1  ;;  %v995_v33 = vpop.eup %994  ;;  %639 = vst [vmem:[%s1348_s19 + $0x10] sm:$0xff] %v607_v24  ;;  %v608_v34 = vmul.f32 0.5, %v576_v25  ;;  %v577_v35 = vadd.f32 1.0, %v993_v27  ;;  %1020 = vtanh.f32 %v520_v26  ;;  %v521_v36 = vmul.f32 0.5, %v460_v31 }
 0x157   : > { %v997_v37 = vpop.eup %996  ;;  %655 = vst [vmem:[%s1348_s19 + $0x90] sm:$0xff] %v623_v28  ;;  %v624_v38 = vmul.f32 0.5, %v592_v29  ;;  %v593_v39 = vadd.f32 1.0, %v995_v33  ;;  %1022 = vtanh.f32 %v536_v30  ;;  %v537_v40 = vmul.f32 0.5, %v500_v32  ;;  %v462_v41 = vpop.f32.mrf.mxu0 }
 0x158   : > { %v502_v42 = vpop.f32.mrf.mxu1  ;;  %v999_v43 = vpop.eup %998  ;;  %640 = vst [vmem:[%s1348_s19 + $0x18] sm:$0xff] %v608_v34  ;;  %v609_v44 = vmul.f32 0.5, %v577_v35  ;;  %v578_v45 = vadd.f32 1.0, %v997_v37  ;;  %1024 = vtanh.f32 %v521_v36  ;;  %v522_v46 = vmul.f32 0.5, %v462_v41 }
 0x159   : > { %v1001_v47 = vpop.eup %1000  ;;  %656 = vst [vmem:[%s1348_s19 + $0x98] sm:$0xff] %v624_v38  ;;  %v625_v48 = vmul.f32 0.5, %v593_v39  ;;  %v594_v49 = vadd.f32 1.0, %v999_v43  ;;  %1026 = vtanh.f32 %v537_v40  ;;  %v538_v50 = vmul.f32 0.5, %v502_v42  ;;  %v464_v51 = vpop.f32.mrf.mxu0 }
 0x15a   : > { %v504_v52 = vpop.f32.mrf.mxu1  ;;  %v1003_v53 = vpop.eup %1002  ;;  %641 = vst [vmem:[%s1348_s19 + $0x20] sm:$0xff] %v609_v44  ;;  %v610_v54 = vmul.f32 0.5, %v578_v45  ;;  %v579_v55 = vadd.f32 1.0, %v1001_v47  ;;  %1028 = vtanh.f32 %v522_v46  ;;  %v523_v56 = vmul.f32 0.5, %v464_v51 }
 0x15b   : > { %v1005_v57 = vpop.eup %1004  ;;  %657 = vst [vmem:[%s1348_s19 + $0xa0] sm:$0xff] %v625_v48  ;;  %v626_v58 = vmul.f32 0.5, %v594_v49  ;;  %v595_v59 = vadd.f32 1.0, %v1003_v53  ;;  %1030 = vtanh.f32 %v538_v50  ;;  %v539_v60 = vmul.f32 0.5, %v504_v52  ;;  %v466_v61 = vpop.f32.mrf.mxu0 }
 0x15c   : > { %v506_v62 = vpop.f32.mrf.mxu1  ;;  %v1007_v63 = vpop.eup %1006  ;;  %642 = vst [vmem:[%s1348_s19 + $0x28] sm:$0xff] %v610_v54  ;;  %v611_v0 = vmul.f32 0.5, %v579_v55  ;;  %v580_v1 = vadd.f32 1.0, %v1005_v57  ;;  %1032 = vtanh.f32 %v523_v56  ;;  %v524_v2 = vmul.f32 0.5, %v466_v61 }
 0x15d   : > { %v1009_v3 = vpop.eup %1008  ;;  %658 = vst [vmem:[%s1348_s19 + $0xa8] sm:$0xff] %v626_v58  ;;  %v627_v4 = vmul.f32 0.5, %v595_v59  ;;  %v596_v5 = vadd.f32 1.0, %v1007_v63  ;;  %1034 = vtanh.f32 %v539_v60  ;;  %v540_v6 = vmul.f32 0.5, %v506_v62 }
 0x15e   : > { %v1011_v7 = vpop.eup %1010  ;;  %643 = vst [vmem:[%s1348_s19 + $0x30] sm:$0xff] %v611_v0  ;;  %v612_v8 = vmul.f32 0.5, %v580_v1  ;;  %v581_v9 = vadd.f32 1.0, %v1009_v3  ;;  %1036 = vtanh.f32 %v524_v2 }
 0x15f   : > { %v1013_v10 = vpop.eup %1012  ;;  %659 = vst [vmem:[%s1348_s19 + $0xb0] sm:$0xff] %v627_v4  ;;  %v628_v11 = vmul.f32 0.5, %v596_v5  ;;  %v597_v12 = vadd.f32 1.0, %v1011_v7  ;;  %1038 = vtanh.f32 %v540_v6 }
 0x160   : > { %v1015_v13 = vpop.eup %1014  ;;  %644 = vst [vmem:[%s1348_s19 + $0x38] sm:$0xff] %v612_v8  ;;  %v613_v14 = vmul.f32 0.5, %v581_v9  ;;  %v582_v15 = vadd.f32 1.0, %v1013_v10 }
 0x161   : > { %v1017_v16 = vpop.eup %1016  ;;  %660 = vst [vmem:[%s1348_s19 + $0xb8] sm:$0xff] %v628_v11  ;;  %v629_v17 = vmul.f32 0.5, %v597_v12  ;;  %v598_v18 = vadd.f32 1.0, %v1015_v13 }
 0x162   : > { %v1019_v19 = vpop.eup %1018  ;;  %645 = vst [vmem:[%s1348_s19 + $0x40] sm:$0xff] %v613_v14  ;;  %v614_v20 = vmul.f32 0.5, %v582_v15  ;;  %v583_v21 = vadd.f32 1.0, %v1017_v16 }
 0x163   : > { %v1021_v22 = vpop.eup %1020  ;;  %661 = vst [vmem:[%s1348_s19 + $0xc0] sm:$0xff] %v629_v17  ;;  %v630_v23 = vmul.f32 0.5, %v598_v18  ;;  %v599_v24 = vadd.f32 1.0, %v1019_v19 }
 0x164   : > { %v1023_v25 = vpop.eup %1022  ;;  %646 = vst [vmem:[%s1348_s19 + $0x48] sm:$0xff] %v614_v20  ;;  %v615_v26 = vmul.f32 0.5, %v583_v21  ;;  %v584_v27 = vadd.f32 1.0, %v1021_v22 }
 0x165   : > { %v1025_v28 = vpop.eup %1024  ;;  %662 = vst [vmem:[%s1348_s19 + $0xc8] sm:$0xff] %v630_v23  ;;  %v631_v29 = vmul.f32 0.5, %v599_v24  ;;  %v600_v30 = vadd.f32 1.0, %v1023_v25 }
 0x166   : > { %v1027_v31 = vpop.eup %1026  ;;  %647 = vst [vmem:[%s1348_s19 + $0x50] sm:$0xff] %v615_v26  ;;  %v616_v32 = vmul.f32 0.5, %v584_v27  ;;  %v585_v33 = vadd.f32 1.0, %v1025_v28 }
 0x167   : > { %v1029_v34 = vpop.eup %1028  ;;  %663 = vst [vmem:[%s1348_s19 + $0xd0] sm:$0xff] %v631_v29  ;;  %v632_v35 = vmul.f32 0.5, %v600_v30  ;;  %v601_v36 = vadd.f32 1.0, %v1027_v31 }
 0x168   : > { %v1031_v37 = vpop.eup %1030  ;;  %648 = vst [vmem:[%s1348_s19 + $0x58] sm:$0xff] %v616_v32  ;;  %v617_v38 = vmul.f32 0.5, %v585_v33  ;;  %v586_v39 = vadd.f32 1.0, %v1029_v34 }
 0x169   : > { %v1033_v40 = vpop.eup %1032  ;;  %664 = vst [vmem:[%s1348_s19 + $0xd8] sm:$0xff] %v632_v35  ;;  %v633_v41 = vmul.f32 0.5, %v601_v36  ;;  %v602_v42 = vadd.f32 1.0, %v1031_v37 }
 0x16a   : > { %v1035_v43 = vpop.eup %1034  ;;  %649 = vst [vmem:[%s1348_s19 + $0x60] sm:$0xff] %v617_v38  ;;  %v618_v44 = vmul.f32 0.5, %v586_v39  ;;  %v587_v45 = vadd.f32 1.0, %v1033_v40 }
 0x16b   : > { %v1037_v46 = vpop.eup %1036  ;;  %665 = vst [vmem:[%s1348_s19 + $0xe0] sm:$0xff] %v633_v41  ;;  %v634_v47 = vmul.f32 0.5, %v602_v42  ;;  %v603_v48 = vadd.f32 1.0, %v1035_v43 }
 0x16c   : > { %v1039_v49 = vpop.eup %1038  ;;  %650 = vst [vmem:[%s1348_s19 + $0x68] sm:$0xff] %v618_v44  ;;  %v619_v50 = vmul.f32 0.5, %v587_v45  ;;  %v588_v51 = vadd.f32 1.0, %v1037_v46 }
 0x16d   : > { %666 = vst [vmem:[%s1348_s19 + $0xe8] sm:$0xff] %v634_v47  ;;  %v635_v52 = vmul.f32 0.5, %v603_v48  ;;  %v604_v53 = vadd.f32 1.0, %v1039_v49 }
 0x16e   : > { %651 = vst [vmem:[%s1348_s19 + $0x70] sm:$0xff] %v619_v50  ;;  %v620_v54 = vmul.f32 0.5, %v588_v51 }
 0x16f   : > { %667 = vst [vmem:[%s1348_s19 + $0xf0] sm:$0xff] %v635_v52  ;;  %v636_v55 = vmul.f32 0.5, %v604_v53 }
 0x170   : > { %652 = vst [vmem:[%s1348_s19 + $0x78] sm:$0xff] %v620_v54 }
 0x171   : > { %668 = vst [vmem:[%s1348_s19 + $0xf8] sm:$0xff] %v636_v55 }
 0x172   : > { %1107 = shalt.err (!%p1104_p5)
}
 0x173   : > { %s1108_s3 = scalar_lea.hbm %s1384_s26, 4096  ;;  %s1112_s27 = scalar_lea.hbm %s1439_s2, 8192 }
 0x174   : > { %p1109_p7 = scmp.ne.s32.totalorder %s1384_s26, %s1108_s3  ;;  %p1113_p9 = scmp.lt.s32.totalorder %s1384_s26, %s1439_s2 }
 0x175   : > { %p1114_p11 = scmp.lt.s32.totalorder %s1112_s27, %s1108_s3 }
 0x176   : > { %p1110_p4 = pnand %p1109_p7, %p1292_p13 }
 0x177   : > { %p1115_p10 = por %p1114_p11, %p1113_p9 }
 0x178   : > { %p1111_p6 = pneg %p1110_p4 }
 0x17a   : > { %p1116_p1 = pnand %p1115_p10, %p1111_p6 }
 0x17c   : > { %1119 = shalt.err (!%p1116_p1)
}
 0x17d   : > { %s1185_s17 = smov 256   ;;  %s1186_s19 = smov 16  }
 0x17e   : > { %881 = dma.vmem_to_hbm [thread:$0]  (%p1292_p13), %s1386_s28, 4096, %s1384_s26, %s670_s12, %s1185_s17, %s1185_s17, %s1186_s19  }
 0x17f PF: > { %s701_s21 = sand.u32 1, %s1158_s9   ;;  %p1453_p8 = scmp.ne.s32.totalorder %s1445_s20, 0 }
 0x180   : > { %p1454_p12 = scmp.ge.s32.totalorder %s1178_s14, 2  ;;  %s702_s23 = scalar_lea.sflag [#allocation4], %s701_s21 }
 0x182   : > { %p892_p0 = pnand %p1454_p12, %p1453_p8 }
 0x184   : > { %p893_p2 = pneg %p892_p0 }
 0x186   : > { %1153 = dma.done.wait (%p893_p2), %s702_s23, 4096  }
 0x187   : > { %1155 = vsyncadd (%p893_p2), %s702_s23, 4294963200  ;;  %s19_s14 = sadd.s32 1, %s1178_s14   ;;  %s1455_s9 = smov %s1162_s10 }
 0x188   : > { %p16_p3 = scmp.ge.s32.totalorder %s19_s14, 4   ;;  %s1456_s10 = smov %s1166_s11 }
 0x189   : > { %s1457_s11 = smov %s1301_s15  ;;  %s1458_s12 = smov %s1174_s13 }
 0x18a   : > { %s1459_s13 = smov %s1461_s25  ;;  %18 = sbr.rel (!%p16_p3) target bundleno = 7 (0x7), region = 78 }
 0x18f   :  { %707 = vsyncpa [#allocation3], 1 }
 0x190   :  { %709 = vsyncpa [#allocation3 + $0x1], 1 }
 0x191   :  { %710 = vsyncpa [#allocation6], 1 }
 0x192   :  { %711 = vsyncpa [#allocation4], 1 }
 0x193   :  { %713 = vsyncpa [#allocation4 + $0x1], 1 }

</bundles_post_ra>
